<compile_context>
chip_gen: v7x
topology: tpu7x:2x2x1
jax: 0.10.0
libtpu: 0.0.40
codegen_flags: <defaults>
</compile_context>

<pallas_src>
import functools

import jax
import jax.numpy as jnp
from jax import lax
from jax.experimental import pallas as pl
from jax.experimental.pallas import tpu as pltpu

_SUBLANES = 8
_LANES = 128
_SAMPLE_QUANTUM = _SUBLANES * _LANES  # 1024 samples per full vreg


def _round_up(x, m):
    return (x + m - 1) // m * m


def _combined_loss_kernel(pred_ref, tgt_ref, out_ref, acc_ref, *,
                          n_valid, n_padded, num_classes, gamma,
                          w_nll, w_smooth, w_focal,
                          tile_n, tiles_per_split):
    p = pl.program_id(0)            # core-split index ("parallel")
    j = pl.program_id(1)            # reduction step within the split

    @pl.when(j == 0)
    def _init():
        acc_ref[...] = jnp.zeros_like(acc_ref)

    logits = pred_ref[...].astype(jnp.float32)      # (C, 8, cols) f32
    tgt = tgt_ref[...].astype(jnp.int32)            # (8, cols)    i32

    # --- class-axis reductions: short unrolled chains over full (8,128) vregs
    m = logits[0]
    for c in range(1, num_classes):
        m = jnp.maximum(m, logits[c])

    sum_e = None        # sum_c exp(x_c - m)
    sum_shift = None    # sum_c (x_c - m)
    tgt_shift = None    # (x_t - m), gather-free select (C tiny & static)
    for c in range(num_classes):
        sh = logits[c] - m
        ex = jnp.exp(sh)                            # single exp pass
        sum_e = ex if sum_e is None else sum_e + ex
        sum_shift = sh if sum_shift is None else sum_shift + sh
        tgt_shift = jnp.where(tgt == c, sh,
                              0.0 if tgt_shift is None else tgt_shift)

    lse = jnp.log(sum_e)                            # (8, cols)
    nll = lse - tgt_shift                           # per-sample CE
    pt = jnp.exp(tgt_shift - lse)                   # target prob (== exp(-nll))

    # focal modulator (1 - pt)**gamma: integer gamma -> unrolled multiplies
    g = float(gamma)
    one_minus_pt = 1.0 - pt
    if g == 2.0:
        mod = one_minus_pt * one_minus_pt
    elif g.is_integer() and 0.0 <= g <= 8.0:
        mod = jnp.ones_like(one_minus_pt)
        for _ in range(int(g)):
            mod = mod * one_minus_pt
    else:
        mod = jnp.maximum(one_minus_pt, 0.0) ** g   # pt can exceed 1 by an ulp

    # -mean(logprobs) over classes = lse - mean(shifted)
    smooth_term = lse - (1.0 / num_classes) * sum_shift

    # all three losses folded into one weighted per-sample value
    combined = w_nll * nll + w_smooth * smooth_term + (w_focal * mod) * nll

    if n_padded == n_valid:                         # trace-time: no padding
        acc_ref[...] += combined
    else:
        cols = combined.shape[-1]
        tile_start = (p * tiles_per_split + j) * tile_n

        @pl.when(tile_start + tile_n <= n_valid)    # full tile: no mask work
        def _acc_full():
            acc_ref[...] += combined

        @pl.when(tile_start + tile_n > n_valid)     # tail tile(s): mask pad
        def _acc_masked():
            row = lax.broadcasted_iota(jnp.int32, combined.shape, 0)
            col = lax.broadcasted_iota(jnp.int32, combined.shape, 1)
            valid = tile_start + row * cols + col < n_valid
            # keep the select (not a multiply) so OOB/pad data can't propagate
            acc_ref[...] += jnp.where(valid, combined, 0.0)

    @pl.when(j == pl.num_programs(1) - 1)
    def _finalize():
        partial = jnp.sum(acc_ref[...])             # one XLU reduce per split
        lane = lax.broadcasted_iota(jnp.int32, out_ref.shape, 1)
        out_ref[...] = jnp.where(lane == 0, partial, 0.0)


def combined_loss(pred, target, *, alpha=0.5, gamma=2.0, smoothing=0.1,
                  ce_weight=0.5, focal_weight=0.3, smooth_weight=0.2,
                  num_classes=5, tile_n=None, num_splits=None):
    """JAX/Pallas equivalent of CombinedLoss.forward(pred, target).

    pred: (N, C) logits (any float dtype; math is f32 in-kernel).
    target: (N,) int class indices.  alpha is the module's uniform scalar.
    """
    N, C = pred.shape
    assert C == num_classes

    if tile_n is None:
        # lane+sublane dense tiles; ~110-170 B/sample of VMEM (double buffers
        # + f32 intermediates) keeps a 65536 tile well under v7x's 64 MiB.
        tile_n = min(_round_up(N, _SAMPLE_QUANTUM), 64 * 1024)
    assert tile_n % _SAMPLE_QUANTUM == 0
    cols = tile_n // _SUBLANES

    if num_splits is None:
        # split the reduction across TensorCores when there is enough work
        # (correct & near-free when run sequentially on 1-TC chips).
        num_splits = 2 if pl.cdiv(N, tile_n) >= 2 else 1

    n_pad = _round_up(N, num_splits * tile_n)
    n_tiles = n_pad // tile_n
    tiles_per_split = n_tiles // num_splits

    # class axis -> leading dim, sample axis -> dense (8 sublane, cols lane)
    # slabs per tile.  Keep pred's wire dtype (bf16 stays bf16); target int8.
    pred_p = jnp.pad(pred, ((0, n_pad - N), (0, 0)))
    pred_t = jnp.transpose(pred_p.reshape(n_tiles, _SUBLANES, cols, C),
                           (0, 3, 1, 2))                     # (T, C, 8, cols)
    tgt_t = jnp.pad(target.astype(jnp.int8), ((0, n_pad - N),))
    tgt_t = tgt_t.reshape(n_tiles, _SUBLANES, cols)          # (T, 8, cols)

    kernel = functools.partial(
        _combined_loss_kernel,
        n_valid=N, n_padded=n_pad, num_classes=C, gamma=float(gamma),
        # fold CE + label-smoothing NLL terms and the uniform focal alpha:
        w_nll=float(ce_weight + smooth_weight * (1.0 - smoothing)),
        w_smooth=float(smooth_weight * smoothing),
        w_focal=float(focal_weight * alpha),
        tile_n=tile_n, tiles_per_split=tiles_per_split)

    out = pl.pallas_call(
        kernel,
        out_shape=jax.ShapeDtypeStruct((1, num_splits * _LANES), jnp.float32),
        grid=(num_splits, tiles_per_split),
        in_specs=[
            pl.BlockSpec((None, C, _SUBLANES, cols),
                         lambda p, j: (p * tiles_per_split + j, 0, 0, 0)),
            pl.BlockSpec((None, _SUBLANES, cols),
                         lambda p, j: (p * tiles_per_split + j, 0, 0)),
        ],
        # per-split lane-dense output slot, written exactly once per split
        out_specs=pl.BlockSpec((1, _LANES), lambda p, j: (0, p)),
        scratch_shapes=[pltpu.VMEM((_SUBLANES, cols), jnp.float32)],
        compiler_params=pltpu.CompilerParams(
            dimension_semantics=("parallel", "arbitrary"),
            vmem_limit_bytes=40 * 1024 * 1024),
    )(pred_t, tgt_t)

    # each split wrote its partial sum into lane 0 of its 128-lane slot
    return jnp.sum(out) * (1.0 / N)


def _reference(pred, target, *, alpha=0.5, gamma=2.0, smoothing=0.1,
               ce_weight=0.5, focal_weight=0.3, smooth_weight=0.2,
               num_classes=5):
    """Pure-JAX reference matching the PyTorch module."""
    logprobs = jax.nn.log_softmax(pred.astype(jnp.float32), axis=-1)
    nll = -jnp.take_along_axis(logprobs, target[:, None], axis=-1)[:, 0]
    ce = jnp.mean(nll)
    alpha_t = (jnp.ones((num_classes,), jnp.float32) * alpha)[target]
    pt = jnp.exp(-nll)
    focal = jnp.mean(alpha_t * (1.0 - pt) ** gamma * nll)
    smooth = jnp.mean((1.0 - smoothing) * nll
                      + smoothing * (-jnp.mean(logprobs, axis=-1)))
    return ce_weight * ce + focal_weight * focal + smooth_weight * smooth


if __name__ == "__main__":
    key = jax.random.PRNGKey(0)
    k1, k2 = jax.random.split(key)
    N, C = 8, 5
    pred = jax.random.normal(k1, (N, C), dtype=jnp.float32)
    target = jax.random.randint(k2, (N,), 0, C, dtype=jnp.int32)

    loss = combined_loss(pred, target)
    jax.block_until_ready(loss)

    ref = _reference(pred, target)
    assert jnp.allclose(loss, ref, rtol=1e-4, atol=1e-4), (loss, ref)
    print("KERNEL_OK")
</pallas_src>

<mosaic_0001>
module attributes {stable_mosaic.version = 11 : i64} {
  func.func @_combined_loss_kernel(%arg0: i32, %arg1: i32, %arg2: memref<1x5x8x128xf32, #tpu.memory_space<vmem>>, %arg3: memref<1x8x128xi8, #tpu.memory_space<vmem>>, %arg4: memref<1x128xf32, #tpu.memory_space<vmem>>, %arg5: memref<8x128xf32, #tpu.memory_space<vmem>>) attributes {dimension_semantics = [#tpu.dimension_semantics<parallel>, #tpu.dimension_semantics<arbitrary>], iteration_bounds = array<i64: 1, 1>, scalar_prefetch = 0 : i64, scratch_operands = 1 : i64, tpu.core_type = #tpu.core_type<tc>, window_params = [{transform_indices = @transform_0, window_bounds = array<i64: 1, 5, 8, 128>}, {transform_indices = @transform_1, window_bounds = array<i64: 1, 8, 128>}, {transform_indices = @transform_2, window_bounds = array<i64: 1, 128>}]} {
    %c0_i32 = arith.constant 0 : i32
    %0 = arith.cmpi eq, %arg1, %c0_i32 : i32
    %1 = arith.extui %0 : i1 to i32
    %c0_i32_0 = arith.constant 0 : i32
    %2 = arith.cmpi ne, %1, %c0_i32_0 : i32
    scf.if %2 {
      %cst_21 = arith.constant 0.000000e+00 : f32
      %99 = vector.broadcast %cst_21 : f32 to vector<8x128xf32>
      %c0_22 = arith.constant 0 : index
      %c0_23 = arith.constant 0 : index
      %100 = vector.load %arg5[%c0_22, %c0_23] : memref<8x128xf32, #tpu.memory_space<vmem>>, vector<8x128xf32>
      tpu.vector_store %arg5[%c0_22, %c0_23], %99 {strides = array<i32>} : memref<8x128xf32, #tpu.memory_space<vmem>>, vector<8x128xf32>,
    } else {
    }
    %c0 = arith.constant 0 : index
    %c0_1 = arith.constant 0 : index
    %c0_2 = arith.constant 0 : index
    %c0_3 = arith.constant 0 : index
    %3 = vector.load %arg2[%c0, %c0_1, %c0_2, %c0_3] : memref<1x5x8x128xf32, #tpu.memory_space<vmem>>, vector<1x5x8x128xf32>
    %4 = vector.shape_cast %3 : vector<1x5x8x128xf32> to vector<5x8x128xf32>
    %c0_4 = arith.constant 0 : index
    %c0_5 = arith.constant 0 : index
    %c0_6 = arith.constant 0 : index
    %5 = vector.load %arg3[%c0_4, %c0_5, %c0_6] : memref<1x8x128xi8, #tpu.memory_space<vmem>>, vector<1x8x128xi8>
    %6 = vector.shape_cast %5 : vector<1x8x128xi8> to vector<8x128xi8>
    %7 = arith.extsi %6 : vector<8x128xi8> to vector<8x128xi32>
    %8 = vector.extract_strided_slice %4 {offsets = [0, 0, 0], sizes = [1, 8, 128], strides = [1, 1, 1]} : vector<5x8x128xf32> to vector<1x8x128xf32>
    %9 = vector.shape_cast %8 : vector<1x8x128xf32> to vector<8x128xf32>
    %10 = vector.extract_strided_slice %4 {offsets = [1, 0, 0], sizes = [1, 8, 128], strides = [1, 1, 1]} : vector<5x8x128xf32> to vector<1x8x128xf32>
    %11 = vector.shape_cast %10 : vector<1x8x128xf32> to vector<8x128xf32>
    %12 = arith.maximumf %9, %11 : vector<8x128xf32>
    %13 = vector.extract_strided_slice %4 {offsets = [2, 0, 0], sizes = [1, 8, 128], strides = [1, 1, 1]} : vector<5x8x128xf32> to vector<1x8x128xf32>
    %14 = vector.shape_cast %13 : vector<1x8x128xf32> to vector<8x128xf32>
    %15 = arith.maximumf %12, %14 : vector<8x128xf32>
    %16 = vector.extract_strided_slice %4 {offsets = [3, 0, 0], sizes = [1, 8, 128], strides = [1, 1, 1]} : vector<5x8x128xf32> to vector<1x8x128xf32>
    %17 = vector.shape_cast %16 : vector<1x8x128xf32> to vector<8x128xf32>
    %18 = arith.maximumf %15, %17 : vector<8x128xf32>
    %19 = vector.extract_strided_slice %4 {offsets = [4, 0, 0], sizes = [1, 8, 128], strides = [1, 1, 1]} : vector<5x8x128xf32> to vector<1x8x128xf32>
    %20 = vector.shape_cast %19 : vector<1x8x128xf32> to vector<8x128xf32>
    %21 = arith.maximumf %18, %20 : vector<8x128xf32>
    %22 = vector.extract_strided_slice %4 {offsets = [0, 0, 0], sizes = [1, 8, 128], strides = [1, 1, 1]} : vector<5x8x128xf32> to vector<1x8x128xf32>
    %23 = vector.shape_cast %22 : vector<1x8x128xf32> to vector<8x128xf32>
    %24 = arith.subf %23, %21 : vector<8x128xf32>
    %25 = math.exp %24 : vector<8x128xf32>
    %c0_i32_7 = arith.constant 0 : i32
    %26 = vector.broadcast %c0_i32_7 : i32 to vector<8x128xi32>
    %27 = arith.cmpi eq, %7, %26 : vector<8x128xi32>
    %cst = arith.constant 0.000000e+00 : f32
    %28 = vector.broadcast %cst : f32 to vector<8x128xf32>
    %29 = arith.select %27, %24, %28 : vector<8x128xi1>, vector<8x128xf32>
    %30 = vector.extract_strided_slice %4 {offsets = [1, 0, 0], sizes = [1, 8, 128], strides = [1, 1, 1]} : vector<5x8x128xf32> to vector<1x8x128xf32>
    %31 = vector.shape_cast %30 : vector<1x8x128xf32> to vector<8x128xf32>
    %32 = arith.subf %31, %21 : vector<8x128xf32>
    %33 = math.exp %32 : vector<8x128xf32>
    %34 = arith.addf %25, %33 : vector<8x128xf32>
    %35 = arith.addf %24, %32 : vector<8x128xf32>
    %c1_i32 = arith.constant 1 : i32
    %36 = vector.broadcast %c1_i32 : i32 to vector<8x128xi32>
    %37 = arith.cmpi eq, %7, %36 : vector<8x128xi32>
    %38 = arith.select %37, %32, %29 : vector<8x128xi1>, vector<8x128xf32>
    %39 = vector.extract_strided_slice %4 {offsets = [2, 0, 0], sizes = [1, 8, 128], strides = [1, 1, 1]} : vector<5x8x128xf32> to vector<1x8x128xf32>
    %40 = vector.shape_cast %39 : vector<1x8x128xf32> to vector<8x128xf32>
    %41 = arith.subf %40, %21 : vector<8x128xf32>
    %42 = math.exp %41 : vector<8x128xf32>
    %43 = arith.addf %34, %42 : vector<8x128xf32>
    %44 = arith.addf %35, %41 : vector<8x128xf32>
    %c2_i32 = arith.constant 2 : i32
    %45 = vector.broadcast %c2_i32 : i32 to vector<8x128xi32>
    %46 = arith.cmpi eq, %7, %45 : vector<8x128xi32>
    %47 = arith.select %46, %41, %38 : vector<8x128xi1>, vector<8x128xf32>
    %48 = vector.extract_strided_slice %4 {offsets = [3, 0, 0], sizes = [1, 8, 128], strides = [1, 1, 1]} : vector<5x8x128xf32> to vector<1x8x128xf32>
    %49 = vector.shape_cast %48 : vector<1x8x128xf32> to vector<8x128xf32>
    %50 = arith.subf %49, %21 : vector<8x128xf32>
    %51 = math.exp %50 : vector<8x128xf32>
    %52 = arith.addf %43, %51 : vector<8x128xf32>
    %53 = arith.addf %44, %50 : vector<8x128xf32>
    %c3_i32 = arith.constant 3 : i32
    %54 = vector.broadcast %c3_i32 : i32 to vector<8x128xi32>
    %55 = arith.cmpi eq, %7, %54 : vector<8x128xi32>
    %56 = arith.select %55, %50, %47 : vector<8x128xi1>, vector<8x128xf32>
    %57 = vector.extract_strided_slice %4 {offsets = [4, 0, 0], sizes = [1, 8, 128], strides = [1, 1, 1]} : vector<5x8x128xf32> to vector<1x8x128xf32>
    %58 = vector.shape_cast %57 : vector<1x8x128xf32> to vector<8x128xf32>
    %59 = arith.subf %58, %21 : vector<8x128xf32>
    %60 = math.exp %59 : vector<8x128xf32>
    %61 = arith.addf %52, %60 : vector<8x128xf32>
    %62 = arith.addf %53, %59 : vector<8x128xf32>
    %c4_i32 = arith.constant 4 : i32
    %63 = vector.broadcast %c4_i32 : i32 to vector<8x128xi32>
    %64 = arith.cmpi eq, %7, %63 : vector<8x128xi32>
    %65 = arith.select %64, %59, %56 : vector<8x128xi1>, vector<8x128xf32>
    %66 = math.log %61 : vector<8x128xf32>
    %67 = arith.subf %66, %65 : vector<8x128xf32>
    %68 = arith.subf %65, %66 : vector<8x128xf32>
    %69 = math.exp %68 : vector<8x128xf32>
    %cst_8 = arith.constant 1.000000e+00 : f32
    %70 = vector.broadcast %cst_8 : f32 to vector<8x128xf32>
    %71 = arith.subf %70, %69 : vector<8x128xf32>
    %72 = arith.mulf %71, %71 : vector<8x128xf32>
    %cst_9 = arith.constant 2.000000e-01 : f32
    %73 = vector.broadcast %cst_9 : f32 to vector<8x128xf32>
    %74 = arith.mulf %73, %62 : vector<8x128xf32>
    %75 = arith.subf %66, %74 : vector<8x128xf32>
    %cst_10 = arith.constant 6.800000e-01 : f32
    %76 = vector.broadcast %cst_10 : f32 to vector<8x128xf32>
    %77 = arith.mulf %76, %67 : vector<8x128xf32>
    %cst_11 = arith.constant 2.000000e-02 : f32
    %78 = vector.broadcast %cst_11 : f32 to vector<8x128xf32>
    %79 = arith.mulf %78, %75 : vector<8x128xf32>
    %80 = arith.addf %77, %79 : vector<8x128xf32>
    %cst_12 = arith.constant 1.500000e-01 : f32
    %81 = vector.broadcast %cst_12 : f32 to vector<8x128xf32>
    %82 = arith.mulf %81, %72 : vector<8x128xf32>
    %83 = arith.mulf %82, %67 : vector<8x128xf32>
    %84 = arith.addf %80, %83 : vector<8x128xf32>
    %c1_i32_13 = arith.constant 1 : i32
    %85 = arith.muli %arg0, %c1_i32_13 : i32
    %86 = arith.addi %85, %arg1 : i32
    %c1024_i32 = arith.constant 1024 : i32
    %87 = arith.muli %86, %c1024_i32 : i32
    %c1024_i32_14 = arith.constant 1024 : i32
    %88 = arith.addi %87, %c1024_i32_14 : i32
    %c8_i32 = arith.constant 8 : i32
    %89 = arith.cmpi sle, %88, %c8_i32 : i32
    %90 = arith.extui %89 : i1 to i32
    %c0_i32_15 = arith.constant 0 : i32
    %91 = arith.cmpi ne, %90, %c0_i32_15 : i32
    scf.if %91 {
      %c0_21 = arith.constant 0 : index
      %c0_22 = arith.constant 0 : index
      %99 = vector.load %arg5[%c0_21, %c0_22] : memref<8x128xf32, #tpu.memory_space<vmem>>, vector<8x128xf32>
      %100 = arith.addf %99, %84 : vector<8x128xf32>
      %c0_23 = arith.constant 0 : index
      %c0_24 = arith.constant 0 : index
      %101 = vector.load %arg5[%c0_23, %c0_24] : memref<8x128xf32, #tpu.memory_space<vmem>>, vector<8x128xf32>
      tpu.vector_store %arg5[%c0_23, %c0_24], %100 {strides = array<i32>} : memref<8x128xf32, #tpu.memory_space<vmem>>, vector<8x128xf32>,
    } else {
    }
    %c1024_i32_16 = arith.constant 1024 : i32
    %92 = arith.addi %87, %c1024_i32_16 : i32
    %c8_i32_17 = arith.constant 8 : i32
    %93 = arith.cmpi sgt, %92, %c8_i32_17 : i32
    %94 = arith.extui %93 : i1 to i32
    %c0_i32_18 = arith.constant 0 : i32
    %95 = arith.cmpi ne, %94, %c0_i32_18 : i32
    scf.if %95 {
      %99 = tpu.iota {dimensions = array<i32: 0>} : vector<8x128xi32>
      %100 = tpu.iota {dimensions = array<i32: 1>} : vector<8x128xi32>
      %c128_i32 = arith.constant 128 : i32
      %101 = vector.broadcast %c128_i32 : i32 to vector<8x128xi32>
      %102 = arith.muli %99, %101 : vector<8x128xi32>
      %103 = vector.broadcast %87 : i32 to vector<8x128xi32>
      %104 = arith.addi %103, %102 : vector<8x128xi32>
      %105 = arith.addi %104, %100 : vector<8x128xi32>
      %c8_i32_21 = arith.constant 8 : i32
      %106 = vector.broadcast %c8_i32_21 : i32 to vector<8x128xi32>
      %107 = arith.cmpi slt, %105, %106 : vector<8x128xi32>
      %c0_22 = arith.constant 0 : index
      %c0_23 = arith.constant 0 : index
      %108 = vector.load %arg5[%c0_22, %c0_23] : memref<8x128xf32, #tpu.memory_space<vmem>>, vector<8x128xf32>
      %cst_24 = arith.constant 0.000000e+00 : f32
      %109 = vector.broadcast %cst_24 : f32 to vector<8x128xf32>
      %110 = arith.select %107, %84, %109 : vector<8x128xi1>, vector<8x128xf32>
      %111 = arith.addf %108, %110 : vector<8x128xf32>
      %c0_25 = arith.constant 0 : index
      %c0_26 = arith.constant 0 : index
      %112 = vector.load %arg5[%c0_25, %c0_26] : memref<8x128xf32, #tpu.memory_space<vmem>>, vector<8x128xf32>
      tpu.vector_store %arg5[%c0_25, %c0_26], %111 {strides = array<i32>} : memref<8x128xf32, #tpu.memory_space<vmem>>, vector<8x128xf32>,
    } else {
    }
    %c0_i32_19 = arith.constant 0 : i32
    %96 = arith.cmpi eq, %arg1, %c0_i32_19 : i32
    %97 = arith.extui %96 : i1 to i32
    %c0_i32_20 = arith.constant 0 : i32
    %98 = arith.cmpi ne, %97, %c0_i32_20 : i32
    scf.if %98 {
      %c0_21 = arith.constant 0 : index
      %c0_22 = arith.constant 0 : index
      %99 = vector.load %arg5[%c0_21, %c0_22] : memref<8x128xf32, #tpu.memory_space<vmem>>, vector<8x128xf32>
      %100 = vector.shape_cast %99 : vector<8x128xf32> to vector<1x8x128xf32>
      %cst_23 = arith.constant dense<0.000000e+00> : vector<1xf32>
      %101 = vector.multi_reduction <add>, %100, %cst_23 [1, 2] : vector<1x8x128xf32> to vector<1xf32>
      %102 = vector.shape_cast %101 : vector<1xf32> to vector<1x1x1xf32>
      %103 = vector.extract %102[0, 0, 0] : f32 from vector<1x1x1xf32>
      %104 = tpu.iota {dimensions = array<i32: 1>} : vector<1x128xi32>
      %c0_i32_24 = arith.constant 0 : i32
      %105 = vector.broadcast %c0_i32_24 : i32 to vector<1x128xi32>
      %106 = arith.cmpi eq, %104, %105 : vector<1x128xi32>
      %cst_25 = arith.constant 0.000000e+00 : f32
      %107 = vector.broadcast %103 : f32 to vector<1x128xf32>
      %108 = vector.broadcast %cst_25 : f32 to vector<1x128xf32>
      %109 = arith.select %106, %107, %108 : vector<1x128xi1>, vector<1x128xf32>
      %c0_26 = arith.constant 0 : index
      %c0_27 = arith.constant 0 : index
      %110 = vector.load %arg4[%c0_26, %c0_27] : memref<1x128xf32, #tpu.memory_space<vmem>>, vector<1x128xf32>
      tpu.vector_store %arg4[%c0_26, %c0_27], %109 {strides = array<i32>} : memref<1x128xf32, #tpu.memory_space<vmem>>, vector<1x128xf32>,
    } else {
    }
    return
  }
  func.func @transform_0(%arg0: i32, %arg1: i32) -> (i32, i32, i32, i32) {
    %c1_i32 = arith.constant 1 : i32
    %0 = arith.muli %arg0, %c1_i32 : i32
    %1 = arith.addi %0, %arg1 : i32
    %c0_i32 = arith.constant 0 : i32
    %c0_i32_0 = arith.constant 0 : i32
    %c0_i32_1 = arith.constant 0 : i32
    %c0_i32_2 = arith.constant 0 : i32
    return %1, %c0_i32, %c0_i32_0, %c0_i32_1 : i32, i32, i32, i32
  }
  func.func @transform_1(%arg0: i32, %arg1: i32) -> (i32, i32, i32) {
    %c1_i32 = arith.constant 1 : i32
    %0 = arith.muli %arg0, %c1_i32 : i32
    %1 = arith.addi %0, %arg1 : i32
    %c0_i32 = arith.constant 0 : i32
    %c0_i32_0 = arith.constant 0 : i32
    %c0_i32_1 = arith.constant 0 : i32
    return %1, %c0_i32, %c0_i32_0 : i32, i32, i32
  }
  func.func @transform_2(%arg0: i32, %arg1: i32) -> (i32, i32) {
    %c0_i32 = arith.constant 0 : i32
    %c0_i32_0 = arith.constant 0 : i32
    return %c0_i32, %arg0 : i32, i32
  }
}

</mosaic_0001>

<bundles_post_ra>
// kernel: tpu_custom_call.1
= control target key start
LH: loop header
LB: loop body
LE: loop exit
PB: predicated region body
PF: predicated region fallthrough
CT: control target
= control target key end

     0   :  { %7 = vsyncpa [#allocation4], 0  ;;  %s294_s0 = inlined_call_operand.hbm [shape: f32[1,5,8,128], index: 0, kind: input, shape index: {}]   ;;  %s295_s1 = inlined_call_operand.vmem [shape: s8[1,8,128], index: 1, kind: input, shape index: {}]   ;;  %s296_s2 = inlined_call_operand.hbm [shape: f32[1,128], index: 2, kind: output, shape index: {}]  }
   0x1   :  { %8 = vsyncpa [#allocation5], 0  ;;  %s248_s9 = smov [#allocation3]   ;;  %s200_s13 = scalar_lea.hbm %s294_s0, 640 }
   0x2   :  { %s18_s10 = sshll.u32 %s248_s9, 4  ;;  %p201_p0 = scmp.ne.s32.totalorder %s294_s0, %s200_s13  ;;  %s19_s10 = int_to_ptr.vmem [resolvable:$true] %s18_s10 }
   0x3   :  { %p204_p1 = scmp.lt.u32.totalorder %s200_s13, %s294_s0 }
   0x5   :  { %p206_p2 = pnand %p204_p1, %p201_p0 }
   0x7   :  { %209 = shalt.err (!%p206_p2)
}
   0x8   :  { %s210_s18 = scalar_lea.vmem %s19_s10, 640  ;;  %p215_p4 = scmp.lt.s32.totalorder %s19_s10, %s19_s10 }
   0x9   :  { %p211_p3 = scmp.ne.s32.totalorder %s19_s10, %s210_s18  ;;  %p216_p5 = scmp.lt.s32.totalorder %s210_s18, %s210_s18 }
   0xb   :  { %p217_p6 = por %p216_p5, %p215_p4 }
   0xd   :  { %p218_p7 = pnand %p217_p6, %p211_p3 }
   0xf   :  { %221 = shalt.err (!%p218_p7)
}
  0x10   :  { %s249_s19 = smov 128   ;;  %s250_s20 = smov 8  }
  0x11   :  { %24 = dma.hbm_to_vmem [thread:$0]  %s294_s0, 640, %s19_s10, [#allocation4], %s249_s19, %s249_s19, %s250_s20  }
  0x12   :  { %244 = dma.done.wait [#allocation4], 640  }
  0x13   :  { %245 = vsyncadd [#allocation4], 4294966656  ;;  %v53_v0 = vld [vmem:[#allocation3] sm:$0xff]  ;;  %v54_v1 = vld [vmem:[#allocation3 + $0x8] sm:$0xff]  ;;  %v127_v43 = vlaneseq }
  0x14   :  { %v55_v2 = vld [vmem:[#allocation3 + $0x10] sm:$0xff]  ;;  %v60_v3 = vmax.f32 %v53_v0, %v54_v1  ;;  %v56_v4 = vld [vmem:[#allocation3 + $0x18] sm:$0xff]  ;;  %v57_v6 = vld [vmem:[#allocation3 + $0x20] sm:$0xff] }
  0x15   :  { %v58_v19 = vld [vmem:[%s295_s1] sm:$0x3]  ;;  %v128_v45 = vshrl.u32 %v127_v43, 7  ;;  %v130_v49 = vand.u32 127, %v127_v43  ;;  %s251_s1 = smov [#allocation6]  }
  0x16   :  { %v61_v5 = vmax.f32 %v60_v3, %v55_v2  ;;  %v59_v22 = vunpack.c.0.s8 %v58_v19  ;;  %s165_s24 = sshll.u32 %s251_s1, 4  ;;  %s166_s24 = int_to_ptr.vmem [resolvable:$true] %s165_s24 }
  0x17   :  { %v131_v50 = vmul.u32 128, %v128_v45  ;;  %vm155_vm6 = vcmp.eq.s32.totalorder %v130_v49, 0  ;;  %s222_s26 = scalar_lea.vmem %s166_s24, 16  ;;  %s226_s27 = scalar_lea.vmem %s166_s24, 32 }
  0x18   :  { %v62_v7 = vmax.f32 %v61_v5, %v56_v4  ;;  %vm67_vm0 = vcmp.eq.s32.totalorder %v59_v22, 0  ;;  %vm74_vm1 = vcmp.eq.s32.totalorder %v59_v22, 1  ;;  %vm81_vm2 = vcmp.eq.s32.totalorder %v59_v22, 2  ;;  %p223_p8 = scmp.ne.s32.totalorder %s166_s24, %s222_s26  ;;  %p227_p9 = scmp.lt.s32.totalorder %s166_s24, %s166_s24 }
  0x19   :  { %vm88_vm3 = vcmp.eq.s32.totalorder %v59_v22, 3  ;;  %vm95_vm4 = vcmp.eq.s32.totalorder %v59_v22, 4  ;;  %v134_v55 = vadd.s32 %v131_v50, %v130_v49  ;;  %p228_p10 = scmp.lt.s32.totalorder %s226_s27, %s222_s26 }
  0x1a   :  { %v63_v8 = vmax.f32 %v62_v7, %v57_v6 }
  0x1b   :  { %vm135_vm5 = vcmp.lt.s32.totalorder %v134_v55, 8  ;;  %p229_p11 = por %p228_p10, %p227_p9 }
  0x1c   :  { %v64_v9 = vsub.f32 %v53_v0, %v63_v8  ;;  %v69_v10 = vsub.f32 %v54_v1, %v63_v8  ;;  %v76_v11 = vsub.f32 %v55_v2, %v63_v8  ;;  %v83_v12 = vsub.f32 %v56_v4, %v63_v8 }
  0x1d   :  { %v90_v13 = vsub.f32 %v57_v6, %v63_v8  ;;  %p230_p12 = pnand %p229_p11, %p223_p8 }
  0x1e   :  { %v65_v14 = vmul.f32 1.442695, %v64_v9  ;;  %v70_v15 = vmul.f32 1.442695, %v69_v10  ;;  %v77_v16 = vmul.f32 1.442695, %v76_v11  ;;  %v73_v32 = vadd.f32 %v69_v10, %v64_v9 }
  0x1f   :  { %v84_v17 = vmul.f32 1.442695, %v83_v12  ;;  %v91_v18 = vmul.f32 1.442695, %v90_v13  ;;  %v68_v29 = vsel %vm67_vm0, %v64_v9, 0.0 }
  0x20   :  { %186 = vpow2.f32 %v65_v14  ;;  %v75_v31 = vsel %vm74_vm1, %v69_v10, %v68_v29  ;;  %v80_v35 = vadd.f32 %v76_v11, %v73_v32 }
  0x21   :  { %188 = vpow2.f32 %v70_v15  ;;  %v82_v33 = vsel %vm81_vm2, %v76_v11, %v75_v31 }
  0x22   :  { %190 = vpow2.f32 %v77_v16  ;;  %v89_v34 = vsel %vm88_vm3, %v83_v12, %v82_v33  ;;  %v87_v39 = vadd.f32 %v83_v12, %v80_v35 }
  0x23   :  { %192 = vpow2.f32 %v84_v17  ;;  %v96_v37 = vsel %vm95_vm4, %v90_v13, %v89_v34 }
  0x24   :  { %194 = vpow2.f32 %v91_v18  ;;  %v94_v42 = vadd.f32 %v90_v13, %v87_v39 }
  0x26   :  { %v105_v44 = vmul.f32 0.2, %v94_v42 }
  0x2a   :  { %v187_v20 = vpop.eup %186 }
  0x2b   :  { %v189_v21 = vpop.eup %188 }
  0x2c   :  { %v191_v23 = vpop.eup %190  ;;  %v72_v24 = vadd.f32 %v189_v21, %v187_v20 }
  0x2d   :  { %v193_v25 = vpop.eup %192 }
  0x2e   :  { %v79_v26 = vadd.f32 %v191_v23, %v72_v24  ;;  %v195_v27 = vpop.eup %194 }
  0x30   :  { %v86_v28 = vadd.f32 %v193_v25, %v79_v26 }
  0x32   :  { %v93_v30 = vadd.f32 %v195_v27, %v86_v28 }
  0x34   :  { %196 = vlog2.f32 %v93_v30 }
  0x3e   :  { %v197_v36 = vpop.eup %196 }
  0x3f   :  { %v98_v38 = vmul.f32 0.6931472, %v197_v36 }
  0x41   :  { %v100_v40 = vsub.f32 %v96_v37, %v98_v38  ;;  %v99_v46 = vsub.f32 %v98_v38, %v96_v37  ;;  %v106_v47 = vsub.f32 %v98_v38, %v105_v44 }
  0x43   :  { %v101_v41 = vmul.f32 1.442695, %v100_v40  ;;  %v107_v52 = vmul.f32 0.68, %v99_v46  ;;  %v108_v53 = vmul.f32 0.02, %v106_v47 }
  0x45   :  { %198 = vpow2.f32 %v101_v41  ;;  %v109_v56 = vadd.f32 %v108_v53, %v107_v52 }
  0x4f   :  { %v199_v48 = vpop.eup %198 }
  0x50   :  { %v103_v51 = vsub.f32 1.0, %v199_v48 }
  0x52   :  { %v104_v54 = vmul.f32 %v103_v51, %v103_v51 }
  0x54   :  { %v110_v57 = vmul.f32 0.15, %v104_v54 }
  0x56   :  { %v111_v58 = vmul.f32 %v110_v57, %v99_v46 }
  0x58   :  { %v112_v59 = vadd.f32 %v111_v58, %v109_v56 }
  0x5a   :  { %v137_v60 = vsel %vm135_vm5, %v112_v59, 0.0 }
  0x5b   :  { %144 = vadd.xlane.f32.xlu0 %v137_v60 }
  0xe8   :  { %v145_v61 = vpop.xlane.xlu0 %144 }
  0xe9   :  { %v146_v62 = vrot.slane %v145_v61, 4 }
  0xeb   :  { %v147_v63 = vadd.f32 %v146_v62, %v145_v61 }
  0xed   :  { %v148_v0 = vrot.slane %v147_v63, 2 }
  0xef   :  { %v149_v1 = vadd.f32 %v148_v0, %v147_v63 }
  0xf1   :  { %v150_v2 = vrot.slane %v149_v1, 1 }
  0xf3   :  { %v151_v3 = vadd.f32 %v150_v2, %v149_v1 }
  0xf5   :  { %180 = vpush %v151_v3 }
 0x126   :  { %s181_s25 = spop %180 }
 0x127   :  { %v156_v4 = vstv %s181_s25 }
 0x128   :  { %v157_v5 = vsel %vm155_vm6, %v156_v4, 0.0 }
 0x129   :  { %158 = vst [vmem:[#allocation6] sm:$0x1] %v157_v5 }
 0x12a   :  { %233 = shalt.err (!%p230_p12)
}
 0x12b   :  { %s234_s30 = scalar_lea.hbm %s296_s2, 16 }
 0x12c   :  { %p235_p13 = scmp.ne.s32.totalorder %s296_s2, %s234_s30  ;;  %p238_p0 = scmp.lt.u32.totalorder %s234_s30, %s296_s2 }
 0x12e   :  { %p240_p1 = pnand %p238_p0, %p235_p13 }
 0x130   :  { %243 = shalt.err (!%p240_p1)
}
 0x131   :  { %168 = dma.vmem_to_hbm [thread:$0]  %s166_s24, 16, %s296_s2, [#allocation5]  }
 0x132   :  { %246 = dma.done.wait [#allocation5], 16  }
 0x133   :  { %247 = vsyncadd [#allocation5], 4294967280 }
 0x134   :  { %172 = vsyncpa [#allocation4], 1 }
 0x135   :  { %173 = vsyncpa [#allocation5], 1 }

</bundles_post_ra>
